<compile_context>
chip_gen: v7x
topology: tpu7x:2x2x1
jax: 0.10.0
libtpu: 0.0.40
codegen_flags: <defaults>
</compile_context>

<pallas_src>
import functools

import jax
import jax.numpy as jnp
from jax.experimental import pallas as pl
from jax.experimental.pallas import tpu as pltpu


def _round_up(a: int, b: int) -> int:
    return (a + b - 1) // b * b


# ----------------------------- tile selection ---------------------------------
def _pick_tm(B: int) -> int:
    # sublane-aligned batch tile; partial edge blocks are fine (masked).
    return min(512, _round_up(B, 8)) if B > 8 else B


def _pick_tn(OUT: int) -> int:
    # Keep tn 256-aligned when OUT >= 256 (v6e/v7x MXU is 2x256x256).
    if OUT >= 512:
        return 512
    if OUT >= 256:
        return 256
    if OUT >= 128:
        return _round_up(OUT, 128)
    return OUT  # tiny OUT: full-extent block (allowed by the (8,128) rule)


def _pick_tk(IN: int, itemsize: int) -> int:
    max_tk = 2048 if itemsize <= 2 else 1024
    if IN <= max_tk:
        return IN  # whole contraction in one step -> no K padding, no accumulator
    return max_tk


def _vmem_limit_bytes(footprint_bytes: int) -> int:
    """Generation-aware scoped-VMEM limit (capacity minus headroom)."""
    try:
        cap = int(pltpu.get_tpu_info().vmem_capacity_bytes)
    except Exception:
        cap = 64 << 20  # conservative: v7x per-TensorCore VMEM
    headroom = 12 << 20
    hard_cap = max(min(cap - headroom, 100 << 20), 16 << 20)
    return int(min(max(4 * footprint_bytes, 32 << 20), hard_cap))


# ----------------------------- kernels -----------------------------------------
def _linear_kernel_single_k(x_ref, w_ref, b_ref, o_ref):
    """Whole contraction in one MXU pass; bias added in f32, no scratch."""
    acc = jnp.dot(x_ref[...], w_ref[...], preferred_element_type=jnp.float32)
    o_ref[...] = (acc + b_ref[...]).astype(o_ref.dtype)


def _linear_kernel_multi_k(x_ref, w_ref, b_ref, o_ref, acc_ref):
    """One (tm, tn) output tile; K is the innermost ("arbitrary") grid axis."""
    k = pl.program_id(2)

    @pl.when(k == 0)
    def _init():
        # Fold the bias add into the accumulator init (no separate epilogue add).
        acc_ref[...] = jnp.broadcast_to(b_ref[...], acc_ref.shape)

    acc_ref[...] += jnp.dot(
        x_ref[...], w_ref[...], preferred_element_type=jnp.float32
    )

    @pl.when(k == pl.num_programs(2) - 1)
    def _finalize():
        o_ref[...] = acc_ref[...].astype(o_ref.dtype)


# ----------------------------- parameter prep (ONE TIME) -----------------------
def pcann_prepare(weight, bias, *, compute_dtype=None):
    """One-time parameter preparation — call at parameter-load time, NOT per forward.

    weight: (OUT, IN)  -- PyTorch Linear convention
    bias:   (OUT,)
    Returns a dict with the pre-transposed, K-padded (and optionally bf16-cast)
    weight, the bias as an f32 row, and the chosen K tile.
    """
    OUT, IN = weight.shape
    compute_dtype = jnp.dtype(compute_dtype or weight.dtype)
    tk = _pick_tk(IN, compute_dtype.itemsize)
    K_pad = _round_up(IN, tk)

    w_t = jnp.asarray(weight, compute_dtype).T  # (IN, OUT)
    if K_pad != IN:
        # Zero K-pad: padded rows contribute exactly 0 to the contraction.
        w_t = jnp.pad(w_t, ((0, K_pad - IN), (0, 0)))
    b_row = jnp.asarray(bias, jnp.float32).reshape(1, OUT)

    return {
        "w": w_t,                    # (K_pad, OUT)
        "b": b_row,                  # (1, OUT), f32
        "tk": tk,
        "in_features": IN,
        "compute_dtype": compute_dtype,
    }


# ----------------------------- forward ------------------------------------------
@functools.partial(
    jax.jit, static_argnames=("tk", "tm", "tn", "in_features", "vmem_limit")
)
def _pcann_forward_impl(x, w_p, b_row, *, tk, tm, tn, in_features, vmem_limit):
    B = x.shape[0]
    K_pad, OUT = w_p.shape
    compute_dtype = w_p.dtype
    out_dtype = x.dtype

    xc = x.astype(compute_dtype) if x.dtype != compute_dtype else x
    if in_features != K_pad:
        # K-axis zero-padding is REQUIRED whenever IN % tk != 0 (M/N edges are
        # handled by Pallas masking and need no padding).
        xc = jnp.pad(xc, ((0, 0), (0, K_pad - in_features)))

    grid_m = pl.cdiv(B, tm)
    grid_n = pl.cdiv(OUT, tn)
    grid_k = K_pad // tk

    isz = jnp.dtype(compute_dtype).itemsize
    osz = jnp.dtype(out_dtype).itemsize
    cost = pl.CostEstimate(
        flops=2 * B * OUT * K_pad,
        transcendentals=0,
        bytes_accessed=int(
            B * K_pad * isz + K_pad * OUT * isz + OUT * 4 + B * OUT * osz
        ),
    )

    if grid_k == 1:
        # Fast path: no K reduction -> no scratch accumulator, no pl.when.
        return pl.pallas_call(
            _linear_kernel_single_k,
            out_shape=jax.ShapeDtypeStruct((B, OUT), out_dtype),
            grid_spec=pltpu.PrefetchScalarGridSpec(
                num_scalar_prefetch=0,
                grid=(grid_m, grid_n),
                in_specs=[
                    pl.BlockSpec((tm, tk), lambda i, j: (i, 0)),  # x tile
                    pl.BlockSpec((tk, tn), lambda i, j: (0, j)),  # w (K, OUT) tile
                    pl.BlockSpec((1, tn), lambda i, j: (0, j)),   # bias tile
                ],
                out_specs=pl.BlockSpec((tm, tn), lambda i, j: (i, j)),
            ),
            compiler_params=pltpu.CompilerParams(
                dimension_semantics=("parallel", "parallel"),
                vmem_limit_bytes=vmem_limit,
            ),
            cost_estimate=cost,
        )(xc, w_p, b_row)

    return pl.pallas_call(
        _linear_kernel_multi_k,
        out_shape=jax.ShapeDtypeStruct((B, OUT), out_dtype),
        grid_spec=pltpu.PrefetchScalarGridSpec(
            num_scalar_prefetch=0,
            grid=(grid_m, grid_n, grid_k),
            in_specs=[
                pl.BlockSpec((tm, tk), lambda i, j, k: (i, k)),  # x tile
                pl.BlockSpec((tk, tn), lambda i, j, k: (k, j)),  # w (K, OUT) tile
                pl.BlockSpec((1, tn), lambda i, j, k: (0, j)),   # bias tile
            ],
            out_specs=pl.BlockSpec((tm, tn), lambda i, j, k: (i, j)),
            scratch_shapes=[pltpu.VMEM((tm, tn), jnp.float32)],
        ),
        compiler_params=pltpu.CompilerParams(
            dimension_semantics=("parallel", "parallel", "arbitrary"),
            vmem_limit_bytes=vmem_limit,
        ),
        cost_estimate=cost,
    )(xc, w_p, b_row)


def pcann_forward(x, prepared, *, tm=None, tn=None, prefer_xla_when_tiny=False):
    """Equivalent of pcann.forward: nn.Linear(layers[0], layers[-1])(x)."""
    B = x.shape[0]
    K_pad, OUT = prepared["w"].shape
    IN = prepared["in_features"]
    tk = prepared["tk"]

    if prefer_xla_when_tiny and (B * OUT * IN) < (1 << 18):
        # Launch overhead dominates at tiny sizes; plain XLA is strictly faster.
        w_valid = prepared["w"][:IN]
        return (x.astype(prepared["compute_dtype"]) @ w_valid
                + prepared["b"][0]).astype(x.dtype)

    if tm is None:
        tm = _pick_tm(B)
    if tn is None:
        tn = _pick_tn(OUT)

    isz = jnp.dtype(prepared["compute_dtype"]).itemsize
    osz = jnp.dtype(x.dtype).itemsize
    footprint = (
        2 * (tm * tk + tk * tn) * isz   # double-buffered x, w tiles
        + 2 * tn * 4                    # double-buffered bias tile (f32)
        + tm * tn * 4                   # f32 accumulator
        + 2 * tm * tn * osz             # double-buffered output tile
    )
    vmem_limit = _vmem_limit_bytes(footprint)

    return _pcann_forward_impl(
        x, prepared["w"], prepared["b"],
        tk=tk, tm=tm, tn=tn, in_features=IN, vmem_limit=vmem_limit,
    )


if __name__ == "__main__":
    # params['layers'] analogue: layers = [32, ..., 16] -> Linear(32, 16)
    IN_FEATURES = 32
    OUT_FEATURES = 16
    BATCH = 8

    key = jax.random.PRNGKey(0)
    kx, kw, kb, kx2, kw2, kb2 = jax.random.split(key, 6)

    x = jax.random.normal(kx, (BATCH, IN_FEATURES), dtype=jnp.float32)
    bound = 1.0 / (IN_FEATURES ** 0.5)
    weight = jax.random.uniform(kw, (OUT_FEATURES, IN_FEATURES),
                                minval=-bound, maxval=bound, dtype=jnp.float32)
    bias = jax.random.uniform(kb, (OUT_FEATURES,),
                              minval=-bound, maxval=bound, dtype=jnp.float32)

    prepared = pcann_prepare(weight, bias)              # one-time param prep
    out = pcann_forward(x, prepared)                     # Pallas single-K path
    out = jax.block_until_ready(out)

    ref = x @ weight.T + bias
    assert out.shape == (BATCH, OUT_FEATURES)
    assert jnp.allclose(out, ref, atol=1e-5, rtol=1e-5)

    # Second check: multi-K accumulator path with K padding + partial N edge block.
    B2, IN2, OUT2 = 64, 1536, 384
    x2 = jax.random.normal(kx2, (B2, IN2), dtype=jnp.float32)
    b2_scale = 1.0 / (IN2 ** 0.5)
    w2 = jax.random.uniform(kw2, (OUT2, IN2), minval=-b2_scale, maxval=b2_scale,
                            dtype=jnp.float32)
    b2 = jax.random.uniform(kb2, (OUT2,), minval=-b2_scale, maxval=b2_scale,
                            dtype=jnp.float32)
    prepared2 = pcann_prepare(w2, b2)
    out2 = jax.block_until_ready(pcann_forward(x2, prepared2))
    ref2 = x2 @ w2.T + b2
    assert out2.shape == (B2, OUT2)
    # Looser tolerance: default-precision f32 MXU matmuls accumulate differently
    # than the XLA reference at K=1536.
    assert jnp.allclose(out2, ref2, atol=2e-2, rtol=2e-2)

    print("KERNEL_OK")
</pallas_src>

<mosaic_0001>
module attributes {stable_mosaic.version = 11 : i64} {
  func.func @_linear_kernel_single_k(%arg0: i32, %arg1: i32, %arg2: memref<8x32xf32, #tpu.memory_space<vmem>>, %arg3: memref<32x16xf32, #tpu.memory_space<vmem>>, %arg4: memref<1x16xf32, #tpu.memory_space<vmem>>, %arg5: memref<8x16xf32, #tpu.memory_space<vmem>>) attributes {dimension_semantics = [#tpu.dimension_semantics<parallel>, #tpu.dimension_semantics<parallel>], iteration_bounds = array<i64: 1, 1>, scalar_prefetch = 0 : i64, scratch_operands = 0 : i64, tpu.core_type = #tpu.core_type<tc>, window_params = [{transform_indices = @transform_0, window_bounds = array<i64: 8, 32>}, {transform_indices = @transform_1, window_bounds = array<i64: 32, 16>}, {transform_indices = @transform_2, window_bounds = array<i64: 1, 16>}, {transform_indices = @transform_3, window_bounds = array<i64: 8, 16>}]} {
    %c0 = arith.constant 0 : index
    %c0_0 = arith.constant 0 : index
    %0 = vector.load %arg2[%c0, %c0_0] : memref<8x32xf32, #tpu.memory_space<vmem>>, vector<8x32xf32>
    %c0_1 = arith.constant 0 : index
    %c0_2 = arith.constant 0 : index
    %1 = vector.load %arg3[%c0_1, %c0_2] : memref<32x16xf32, #tpu.memory_space<vmem>>, vector<32x16xf32>
    %cst = arith.constant dense<0.000000e+00> : vector<8x16xf32>
    %2 = tpu.matmul %0, %1, %cst {dimension_numbers = #tpu.dot_dimension_numbers<[1], [0], [0], [1], [0, 0, 1, 1], [], []>} : vector<8x32xf32>, vector<32x16xf32>, vector<8x16xf32> -> vector<8x16xf32>
    %c0_3 = arith.constant 0 : index
    %c0_4 = arith.constant 0 : index
    %3 = vector.load %arg4[%c0_3, %c0_4] : memref<1x16xf32, #tpu.memory_space<vmem>>, vector<1x16xf32>
    %4 = vector.broadcast %3 : vector<1x16xf32> to vector<8x16xf32>
    %5 = arith.addf %2, %4 : vector<8x16xf32>
    %c0_5 = arith.constant 0 : index
    %c0_6 = arith.constant 0 : index
    %6 = vector.load %arg5[%c0_5, %c0_6] : memref<8x16xf32, #tpu.memory_space<vmem>>, vector<8x16xf32>
    tpu.vector_store %arg5[%c0_5, %c0_6], %5 {strides = array<i32>} : memref<8x16xf32, #tpu.memory_space<vmem>>, vector<8x16xf32>,
    return
  }
  func.func @transform_0(%arg0: i32, %arg1: i32) -> (i32, i32) {
    %c0_i32 = arith.constant 0 : i32
    %c0_i32_0 = arith.constant 0 : i32
    return %arg0, %c0_i32 : i32, i32
  }
  func.func @transform_1(%arg0: i32, %arg1: i32) -> (i32, i32) {
    %c0_i32 = arith.constant 0 : i32
    %c0_i32_0 = arith.constant 0 : i32
    return %c0_i32, %arg1 : i32, i32
  }
  func.func @transform_2(%arg0: i32, %arg1: i32) -> (i32, i32) {
    %c0_i32 = arith.constant 0 : i32
    %c0_i32_0 = arith.constant 0 : i32
    return %c0_i32, %arg1 : i32, i32
  }
  func.func @transform_3(%arg0: i32, %arg1: i32) -> (i32, i32) {
    %c0_i32 = arith.constant 0 : i32
    return %arg0, %arg1 : i32, i32
  }
}

</mosaic_0001>

<bundles_post_ra>
// kernel: _pcann_forward_impl.1
= control target key start
LH: loop header
LB: loop body
LE: loop exit
PB: predicated region body
PF: predicated region fallthrough
CT: control target
= control target key end

     0   :  { %v169_v3 = vmov 0.0|0.0   ;;  %vm170_vm0 = vmmov 0   ;;  %v171_v6 = vmov 0.0   ;;  %s223_s0 = inlined_call_operand.vmem [shape: f32[8,32], index: 0, kind: input, shape index: {}]   ;;  %s224_s1 = inlined_call_operand.vmem [shape: f32[32,16], index: 1, kind: input, shape index: {}]   ;;  %s225_s2 = inlined_call_operand.vmem [shape: f32[1,16], index: 2, kind: input, shape index: {}]   ;;  %s226_s3 = inlined_call_operand.hbm [shape: f32[8,16], index: 3, kind: output, shape index: {}]  }
   0x1   :  { %v16_v0 = vld [vmem:[%s224_s1] sm:$0xff]  ;;  %v17_v1 = vld [vmem:[%s224_s1 + $0x8] sm:$0xff]  ;;  %v18_v2 = vld [vmem:[%s224_s1 + $0x10] sm:$0xff]  ;;  %135 = vmatprep.subr.bf16.mxu0 %v169_v3  ;;  %132 = vmatprep.mubr.msk.f32.mxu0 %vm170_vm0, %v171_v6 }
   0x2   :  { %v136_v4 = vpack.c.bf16 %v17_v1, %v16_v0  ;;  %v19_v5 = vld [vmem:[%s224_s1 + $0x18] sm:$0xff] }
   0x3   :  { %8 = vsyncpa [#allocation3], 0  ;;  %v139_v7 = vpack.c.bf16 %v19_v5, %v18_v2  ;;  %v15_v8 = vld [vmem:[%s223_s0] sm:$0xff]  ;;  %vm27_vm1 = vcmask 261120   ;;  %s172_s24 = smov [#allocation2]   ;;  %vm101_vm2 = vcmask 130048  }
   0x4   :  { %137 = vmatpush3.bf16.msra.mxu0 %v136_v4  ;;  %v117_v9 = vld [vmem:[%s225_s2] ss:$0 sm:$0xff]  ;;  %s109_s1 = sshll.u32 %s172_s24, 4  ;;  %s110_s1 = int_to_ptr.vmem [resolvable:$true] %s109_s1 }
   0x5   :  { %138 = vmatprep.subr.bf16.mxu0 %v169_v3  ;;  %s145_s25 = scalar_lea.vmem %s110_s1, 128  ;;  %p150_p1 = scmp.lt.s32.totalorder %s110_s1, %s110_s1 }
   0x6   :  { %p146_p0 = scmp.ne.s32.totalorder %s110_s1, %s145_s25  ;;  %p151_p2 = scmp.lt.s32.totalorder %s145_s25, %s145_s25 }
   0x8   :  { %140 = vmatpush3.bf16.msra.mxu0 %v139_v7  ;;  %p152_p3 = por %p151_p2, %p150_p1 }
   0xa   :  { %p153_p4 = pnand %p152_p3, %p146_p0 }
   0xb   :  { %133 = vmatmul.mubr.msk.f32.vlgmr.msra.gmra.mrb[0].mxu0 %vm27_vm1, %v15_v8 }
  0xde   :  { %v97_v10 = vpop.f32.mrb[0].mxu0 }
  0xdf   :  { %v98_v11 = vadd.f32 %v117_v9, %v97_v10  ;;  %v134_v12 = vpop.f32.mrb[1].mxu0 }
  0xe1   :  { %102 = vst.msk [vmem:[#allocation2] sm:$0xff] %vm101_vm2, %v98_v11 }
  0xe2   :  { %156 = shalt.err (!%p153_p4)
}
  0xe3   :  { %s157_s27 = scalar_lea.hbm %s226_s3, 128 }
  0xe4   :  { %p158_p5 = scmp.ne.s32.totalorder %s226_s3, %s157_s27  ;;  %p161_p6 = scmp.lt.u32.totalorder %s157_s27, %s226_s3 }
  0xe6   :  { %p163_p7 = pnand %p161_p6, %p158_p5 }
  0xe8   :  { %166 = shalt.err (!%p163_p7)
}
  0xe9   :  { %112 = dma.vmem_to_hbm [thread:$0]  %s110_s1, 128, %s226_s3, [#allocation3]  }
  0xea   :  { %167 = dma.done.wait [#allocation3], 128  }
  0xeb   :  { %168 = vsyncadd [#allocation3], 4294967168 }
  0xec   :  { %116 = vsyncpa [#allocation3], 1 }

</bundles_post_ra>
